<compile_context>
chip_gen: v7x
topology: tpu7x:2x2x1
jax: 0.10.0
libtpu: 0.0.40
codegen_flags: <defaults>
</compile_context>

<pallas_src>
import functools

import jax
import jax.numpy as jnp
from jax.experimental import pallas as pl
from jax.experimental.pallas import tpu as pltpu


def update_block_kernel(s_ref, vec_ref,
                        w_uv_ref, w1s_ref, w1v_ref, b1_ref,
                        w2_ref, b2_ref,
                        ds_ref, dvec_ref):
    # s_ref:    (TN, F)        vec_ref: (TN, 3F)  (3 spatial components on lanes)
    # w_uv_ref: (F, 2F)        w1s/w1v: (F, F)    b1: (1, F)
    # w2_ref:   (F, 3F)        b2:      (1, 3F)
    # ds_ref:   (TN, F)        dvec_ref:(TN, 3F)
    TN, F = s_ref.shape
    mm_dtype = w_uv_ref.dtype          # matmul operand dtype (f32 or bf16)

    # --- linear_vec: one (TN,F)@(F,2F) dot per spatial component.
    u_comp = []
    vec_dot = None
    vn2 = None
    for k in range(3):
        vk = vec_ref[:, k * F:(k + 1) * F].astype(mm_dtype)        # lane-slice view
        uvk = jnp.dot(vk, w_uv_ref[...],
                      preferred_element_type=jnp.float32)          # (TN, 2F) f32
        u_k = uvk[:, :F]
        v_k = uvk[:, F:]
        u_comp.append(u_k)
        if k == 0:
            vec_dot = u_k * v_k
            vn2 = v_k * v_k
        else:
            vec_dot = vec_dot + u_k * v_k
            vn2 = vn2 + v_k * v_k
    vec_vn = jnp.sqrt(vn2 + 1e-8)                                  # (TN, F) f32

    # --- linear_svec: Linear(2F->F) as two split-weight dots (no lane concat
    #     of [s | vec_Vn]), SiLU, then one fused Linear(F->3F) head dot.
    h = (jnp.dot(s_ref[...].astype(mm_dtype), w1s_ref[...],
                 preferred_element_type=jnp.float32)
         + jnp.dot(vec_vn.astype(mm_dtype), w1v_ref[...],
                   preferred_element_type=jnp.float32)
         + b1_ref[...])
    h = h * jax.nn.sigmoid(h)                                      # SiLU (f32)

    w_out = jnp.dot(h.astype(mm_dtype), w2_ref[...],
                    preferred_element_type=jnp.float32) + b2_ref[...]   # (TN, 3F)
    a_vv = w_out[:, :F]
    a_sv = w_out[:, F:2 * F]
    a_ss = w_out[:, 2 * F:]

    ds_ref[...] = (a_ss + a_sv * vec_dot).astype(ds_ref.dtype)
    # dvec[n, k, :] = a_vv[n, :] * U_k[n, :]  -- three direct slab stores.
    for k in range(3):
        dvec_ref[:, k * F:(k + 1) * F] = (a_vv * u_comp[k]).astype(dvec_ref.dtype)


@functools.partial(jax.jit, static_argnames=("tile_n", "matmul_dtype"))
def update_block(s, vec, w_vec, w1, b1, w2, b2, *,
                 tile_n=512, matmul_dtype=jnp.float32):
    """s: (N, F); vec: (N, 3, F); weights in PyTorch (out, in) layout.

    For production, F should be (padded to) a multiple of 128 so all lane
    slices / stores are tile-aligned and the MXU is fully utilized.
    """
    N, F = s.shape
    vec2d = vec.reshape(N, 3 * F)          # free reshape, no HBM transpose

    # Wrapper-side (tiny) weight prep: transpose to (in, out), fuse heads.
    w_uv = w_vec.T.astype(matmul_dtype)              # (F, 2F): [U | V] heads
    w1s = w1[:, :F].T.astype(matmul_dtype)           # (F, F)  multiplies s
    w1v = w1[:, F:].T.astype(matmul_dtype)           # (F, F)  multiplies vec_Vn
    b1_2d = b1.reshape(1, F).astype(jnp.float32)
    w2f = w2.T.astype(matmul_dtype)                  # (F, 3F): [vv | sv | ss]
    b2_2d = b2.reshape(1, 3 * F).astype(jnp.float32)

    # Node-tile size: big tiles for HBM-roofline, but keep >=2 grid steps when
    # possible so ("parallel",) can split the grid across v7x's 2 TensorCores.
    if N > tile_n:
        tn = tile_n
    elif N >= 16:
        tn = ((-(-N // 2) + 7) // 8) * 8             # ~half of N, rounded to 8
    else:
        tn = N
    grid = (pl.cdiv(N, tn),)

    row_f = pl.BlockSpec((tn, F), lambda i: (i, 0))
    row_3f = pl.BlockSpec((tn, 3 * F), lambda i: (i, 0))

    def const_spec(shape):                           # VMEM-resident weight/bias
        return pl.BlockSpec(shape, lambda i: (0, 0))

    ds, dvec2d = pl.pallas_call(
        update_block_kernel,
        out_shape=(
            jax.ShapeDtypeStruct((N, F), s.dtype),
            jax.ShapeDtypeStruct((N, 3 * F), s.dtype),
        ),
        grid=grid,
        in_specs=[
            row_f,                         # s
            row_3f,                        # vec (flattened to (N, 3F))
            const_spec((F, 2 * F)),        # w_uv
            const_spec((F, F)),            # w1s
            const_spec((F, F)),            # w1v
            const_spec((1, F)),            # b1
            const_spec((F, 3 * F)),        # w2 (fused heads)
            const_spec((1, 3 * F)),        # b2
        ],
        out_specs=(row_f, row_3f),
        compiler_params=pltpu.CompilerParams(
            dimension_semantics=("parallel",),
            vmem_limit_bytes=48 * 1024 * 1024,
        ),
    )(s, vec2d, w_uv, w1s, w1v, b1_2d, w2f, b2_2d)

    # NOTE: when N % tn != 0, padded tail rows compute sqrt/sigmoid on
    # uninitialized VMEM; output writes are masked so results are correct.
    return ds, dvec2d.reshape(N, 3, F)     # free reshape back to (N, 3, F)


def reference(s, vec, w_vec, w1, b1, w2, b2):
    """Pure-JAX replica of the PyTorch forward for verification."""
    F = s.shape[-1]
    uv = vec @ w_vec.T                                   # (N, 3, 2F)
    U, V = uv[..., :F], uv[..., F:]
    vec_dot = (U * V).sum(axis=1)                        # (N, F)
    vec_Vn = jnp.sqrt((V ** 2).sum(axis=-2) + 1e-8)      # (N, F)
    x = jnp.concatenate([s, vec_Vn], axis=-1)
    h = x @ w1.T + b1
    h = h * jax.nn.sigmoid(h)
    w = h @ w2.T + b2
    a_vv, a_sv, a_ss = w[:, :F], w[:, F:2 * F], w[:, 2 * F:]
    ds = a_ss + a_sv * vec_dot
    dvec = a_vv[:, None, :] * U
    return ds, dvec


if __name__ == "__main__":
    N, F = 16, 32  # nodes, num_features (small demo; tn=8 -> 2-step grid)

    key = jax.random.PRNGKey(0)
    k_s, k_v, k_w0, k_w1, k_b1, k_w2, k_b2 = jax.random.split(key, 7)

    s = jax.random.normal(k_s, (N, F), dtype=jnp.float32)
    vec = jax.random.normal(k_v, (N, 3, F), dtype=jnp.float32)

    # PyTorch nn.Linear weight layout: (out, in).
    w_vec = jax.random.normal(k_w0, (2 * F, F), dtype=jnp.float32) * 0.1
    w1 = jax.random.normal(k_w1, (F, 2 * F), dtype=jnp.float32) * 0.1
    b1 = jax.random.normal(k_b1, (F,), dtype=jnp.float32) * 0.1
    w2 = jax.random.normal(k_w2, (3 * F, F), dtype=jnp.float32) * 0.1
    b2 = jax.random.normal(k_b2, (3 * F,), dtype=jnp.float32) * 0.1

    ds, dvec = update_block(s, vec, w_vec, w1, b1, w2, b2)
    jax.block_until_ready((ds, dvec))

    ds_ref, dvec_ref = reference(s, vec, w_vec, w1, b1, w2, b2)
    assert ds.shape == (N, F) and dvec.shape == (N, 3, F)
    assert jnp.allclose(ds, ds_ref, atol=2e-4, rtol=2e-4)
    assert jnp.allclose(dvec, dvec_ref, atol=2e-4, rtol=2e-4)

    print("KERNEL_OK")
</pallas_src>

<mosaic_0001>
module attributes {stable_mosaic.version = 11 : i64} {
  func.func @update_block_kernel(%arg0: i32, %arg1: memref<8x32xf32, #tpu.memory_space<vmem>>, %arg2: memref<8x96xf32, #tpu.memory_space<vmem>>, %arg3: memref<32x64xf32, #tpu.memory_space<vmem>>, %arg4: memref<32x32xf32, #tpu.memory_space<vmem>>, %arg5: memref<32x32xf32, #tpu.memory_space<vmem>>, %arg6: memref<1x32xf32, #tpu.memory_space<vmem>>, %arg7: memref<32x96xf32, #tpu.memory_space<vmem>>, %arg8: memref<1x96xf32, #tpu.memory_space<vmem>>, %arg9: memref<8x32xf32, #tpu.memory_space<vmem>>, %arg10: memref<8x96xf32, #tpu.memory_space<vmem>>) attributes {dimension_semantics = [#tpu.dimension_semantics<parallel>], iteration_bounds = array<i64: 2>, scalar_prefetch = 0 : i64, scratch_operands = 0 : i64, tpu.core_type = #tpu.core_type<tc>, window_params = [{transform_indices = @transform_0, window_bounds = array<i64: 8, 32>}, {transform_indices = @transform_1, window_bounds = array<i64: 8, 96>}, {pipeline_mode = #tpu.pipeline_mode<synchronous>, transform_indices = @transform_2, window_bounds = array<i64: 32, 64>}, {pipeline_mode = #tpu.pipeline_mode<synchronous>, transform_indices = @transform_3, window_bounds = array<i64: 32, 32>}, {pipeline_mode = #tpu.pipeline_mode<synchronous>, transform_indices = @transform_4, window_bounds = array<i64: 32, 32>}, {pipeline_mode = #tpu.pipeline_mode<synchronous>, transform_indices = @transform_5, window_bounds = array<i64: 1, 32>}, {pipeline_mode = #tpu.pipeline_mode<synchronous>, transform_indices = @transform_6, window_bounds = array<i64: 32, 96>}, {pipeline_mode = #tpu.pipeline_mode<synchronous>, transform_indices = @transform_7, window_bounds = array<i64: 1, 96>}, {transform_indices = @transform_8, window_bounds = array<i64: 8, 32>}, {transform_indices = @transform_9, window_bounds = array<i64: 8, 96>}]} {
    %c0 = arith.constant 0 : index
    %c0_0 = arith.constant 0 : index
    %0 = vector.load %arg2[%c0, %c0_0] : memref<8x96xf32, #tpu.memory_space<vmem>>, vector<8x32xf32>
    %c0_1 = arith.constant 0 : index
    %c0_2 = arith.constant 0 : index
    %1 = vector.load %arg3[%c0_1, %c0_2] : memref<32x64xf32, #tpu.memory_space<vmem>>, vector<32x64xf32>
    %cst = arith.constant dense<0.000000e+00> : vector<8x64xf32>
    %2 = tpu.matmul %0, %1, %cst {dimension_numbers = #tpu.dot_dimension_numbers<[1], [0], [0], [1], [0, 0, 1, 1], [], []>} : vector<8x32xf32>, vector<32x64xf32>, vector<8x64xf32> -> vector<8x64xf32>
    %3 = vector.extract_strided_slice %2 {offsets = [0, 0], sizes = [8, 32], strides = [1, 1]} : vector<8x64xf32> to vector<8x32xf32>
    %4 = vector.extract_strided_slice %2 {offsets = [0, 32], sizes = [8, 32], strides = [1, 1]} : vector<8x64xf32> to vector<8x32xf32>
    %5 = arith.mulf %3, %4 : vector<8x32xf32>
    %6 = arith.mulf %4, %4 : vector<8x32xf32>
    %c0_3 = arith.constant 0 : index
    %c32 = arith.constant 32 : index
    %7 = vector.load %arg2[%c0_3, %c32] : memref<8x96xf32, #tpu.memory_space<vmem>>, vector<8x32xf32>
    %c0_4 = arith.constant 0 : index
    %c0_5 = arith.constant 0 : index
    %8 = vector.load %arg3[%c0_4, %c0_5] : memref<32x64xf32, #tpu.memory_space<vmem>>, vector<32x64xf32>
    %cst_6 = arith.constant dense<0.000000e+00> : vector<8x64xf32>
    %9 = tpu.matmul %7, %8, %cst_6 {dimension_numbers = #tpu.dot_dimension_numbers<[1], [0], [0], [1], [0, 0, 1, 1], [], []>} : vector<8x32xf32>, vector<32x64xf32>, vector<8x64xf32> -> vector<8x64xf32>
    %10 = vector.extract_strided_slice %9 {offsets = [0, 0], sizes = [8, 32], strides = [1, 1]} : vector<8x64xf32> to vector<8x32xf32>
    %11 = vector.extract_strided_slice %9 {offsets = [0, 32], sizes = [8, 32], strides = [1, 1]} : vector<8x64xf32> to vector<8x32xf32>
    %12 = arith.mulf %10, %11 : vector<8x32xf32>
    %13 = arith.addf %5, %12 : vector<8x32xf32>
    %14 = arith.mulf %11, %11 : vector<8x32xf32>
    %15 = arith.addf %6, %14 : vector<8x32xf32>
    %c0_7 = arith.constant 0 : index
    %c64 = arith.constant 64 : index
    %16 = vector.load %arg2[%c0_7, %c64] : memref<8x96xf32, #tpu.memory_space<vmem>>, vector<8x32xf32>
    %c0_8 = arith.constant 0 : index
    %c0_9 = arith.constant 0 : index
    %17 = vector.load %arg3[%c0_8, %c0_9] : memref<32x64xf32, #tpu.memory_space<vmem>>, vector<32x64xf32>
    %cst_10 = arith.constant dense<0.000000e+00> : vector<8x64xf32>
    %18 = tpu.matmul %16, %17, %cst_10 {dimension_numbers = #tpu.dot_dimension_numbers<[1], [0], [0], [1], [0, 0, 1, 1], [], []>} : vector<8x32xf32>, vector<32x64xf32>, vector<8x64xf32> -> vector<8x64xf32>
    %19 = vector.extract_strided_slice %18 {offsets = [0, 0], sizes = [8, 32], strides = [1, 1]} : vector<8x64xf32> to vector<8x32xf32>
    %20 = vector.extract_strided_slice %18 {offsets = [0, 32], sizes = [8, 32], strides = [1, 1]} : vector<8x64xf32> to vector<8x32xf32>
    %21 = arith.mulf %19, %20 : vector<8x32xf32>
    %22 = arith.addf %13, %21 : vector<8x32xf32>
    %23 = arith.mulf %20, %20 : vector<8x32xf32>
    %24 = arith.addf %15, %23 : vector<8x32xf32>
    %cst_11 = arith.constant 9.99999993E-9 : f32
    %25 = vector.broadcast %cst_11 : f32 to vector<8x32xf32>
    %26 = arith.addf %24, %25 : vector<8x32xf32>
    %27 = math.sqrt %26 : vector<8x32xf32>
    %c0_12 = arith.constant 0 : index
    %c0_13 = arith.constant 0 : index
    %28 = vector.load %arg1[%c0_12, %c0_13] : memref<8x32xf32, #tpu.memory_space<vmem>>, vector<8x32xf32>
    %c0_14 = arith.constant 0 : index
    %c0_15 = arith.constant 0 : index
    %29 = vector.load %arg4[%c0_14, %c0_15] : memref<32x32xf32, #tpu.memory_space<vmem>>, vector<32x32xf32>
    %cst_16 = arith.constant dense<0.000000e+00> : vector<8x32xf32>
    %30 = tpu.matmul %28, %29, %cst_16 {dimension_numbers = #tpu.dot_dimension_numbers<[1], [0], [0], [1], [0, 0, 1, 1], [], []>} : vector<8x32xf32>, vector<32x32xf32>, vector<8x32xf32> -> vector<8x32xf32>
    %c0_17 = arith.constant 0 : index
    %c0_18 = arith.constant 0 : index
    %31 = vector.load %arg5[%c0_17, %c0_18] : memref<32x32xf32, #tpu.memory_space<vmem>>, vector<32x32xf32>
    %cst_19 = arith.constant dense<0.000000e+00> : vector<8x32xf32>
    %32 = tpu.matmul %27, %31, %cst_19 {dimension_numbers = #tpu.dot_dimension_numbers<[1], [0], [0], [1], [0, 0, 1, 1], [], []>} : vector<8x32xf32>, vector<32x32xf32>, vector<8x32xf32> -> vector<8x32xf32>
    %33 = arith.addf %30, %32 : vector<8x32xf32>
    %c0_20 = arith.constant 0 : index
    %c0_21 = arith.constant 0 : index
    %34 = vector.load %arg6[%c0_20, %c0_21] : memref<1x32xf32, #tpu.memory_space<vmem>>, vector<1x32xf32>
    %35 = vector.broadcast %34 : vector<1x32xf32> to vector<8x32xf32>
    %36 = arith.addf %33, %35 : vector<8x32xf32>
    %37 = arith.negf %36 : vector<8x32xf32>
    %38 = math.exp %37 : vector<8x32xf32>
    %cst_22 = arith.constant 1.000000e+00 : f32
    %39 = vector.broadcast %cst_22 : f32 to vector<8x32xf32>
    %40 = arith.addf %39, %38 : vector<8x32xf32>
    %41 = arith.divf %39, %40 : vector<8x32xf32>
    %42 = arith.mulf %36, %41 : vector<8x32xf32>
    %c0_23 = arith.constant 0 : index
    %c0_24 = arith.constant 0 : index
    %43 = vector.load %arg7[%c0_23, %c0_24] : memref<32x96xf32, #tpu.memory_space<vmem>>, vector<32x96xf32>
    %cst_25 = arith.constant dense<0.000000e+00> : vector<8x96xf32>
    %44 = tpu.matmul %42, %43, %cst_25 {dimension_numbers = #tpu.dot_dimension_numbers<[1], [0], [0], [1], [0, 0, 1, 1], [], []>} : vector<8x32xf32>, vector<32x96xf32>, vector<8x96xf32> -> vector<8x96xf32>
    %c0_26 = arith.constant 0 : index
    %c0_27 = arith.constant 0 : index
    %45 = vector.load %arg8[%c0_26, %c0_27] : memref<1x96xf32, #tpu.memory_space<vmem>>, vector<1x96xf32>
    %46 = vector.broadcast %45 : vector<1x96xf32> to vector<8x96xf32>
    %47 = arith.addf %44, %46 : vector<8x96xf32>
    %48 = vector.extract_strided_slice %47 {offsets = [0, 0], sizes = [8, 32], strides = [1, 1]} : vector<8x96xf32> to vector<8x32xf32>
    %49 = vector.extract_strided_slice %47 {offsets = [0, 32], sizes = [8, 32], strides = [1, 1]} : vector<8x96xf32> to vector<8x32xf32>
    %50 = vector.extract_strided_slice %47 {offsets = [0, 64], sizes = [8, 32], strides = [1, 1]} : vector<8x96xf32> to vector<8x32xf32>
    %51 = arith.mulf %49, %22 : vector<8x32xf32>
    %52 = arith.addf %50, %51 : vector<8x32xf32>
    %c0_28 = arith.constant 0 : index
    %c0_29 = arith.constant 0 : index
    %53 = vector.load %arg9[%c0_28, %c0_29] : memref<8x32xf32, #tpu.memory_space<vmem>>, vector<8x32xf32>
    tpu.vector_store %arg9[%c0_28, %c0_29], %52 {strides = array<i32>} : memref<8x32xf32, #tpu.memory_space<vmem>>, vector<8x32xf32>,
    %54 = arith.mulf %48, %3 : vector<8x32xf32>
    %c0_30 = arith.constant 0 : index
    %c0_31 = arith.constant 0 : index
    %55 = vector.load %arg10[%c0_30, %c0_31] : memref<8x96xf32, #tpu.memory_space<vmem>>, vector<8x32xf32>
    tpu.vector_store %arg10[%c0_30, %c0_31], %54 {strides = array<i32>} : memref<8x96xf32, #tpu.memory_space<vmem>>, vector<8x32xf32>,
    %56 = arith.mulf %48, %10 : vector<8x32xf32>
    %c0_32 = arith.constant 0 : index
    %c32_33 = arith.constant 32 : index
    %57 = vector.load %arg10[%c0_32, %c32_33] : memref<8x96xf32, #tpu.memory_space<vmem>>, vector<8x32xf32>
    tpu.vector_store %arg10[%c0_32, %c32_33], %56 {strides = array<i32>} : memref<8x96xf32, #tpu.memory_space<vmem>>, vector<8x32xf32>,
    %58 = arith.mulf %48, %19 : vector<8x32xf32>
    %c0_34 = arith.constant 0 : index
    %c64_35 = arith.constant 64 : index
    %59 = vector.load %arg10[%c0_34, %c64_35] : memref<8x96xf32, #tpu.memory_space<vmem>>, vector<8x32xf32>
    tpu.vector_store %arg10[%c0_34, %c64_35], %58 {strides = array<i32>} : memref<8x96xf32, #tpu.memory_space<vmem>>, vector<8x32xf32>,
    return
  }
  func.func @transform_0(%arg0: i32) -> (i32, i32) {
    %c0_i32 = arith.constant 0 : i32
    %c0_i32_0 = arith.constant 0 : i32
    return %arg0, %c0_i32 : i32, i32
  }
  func.func @transform_1(%arg0: i32) -> (i32, i32) {
    %c0_i32 = arith.constant 0 : i32
    %c0_i32_0 = arith.constant 0 : i32
    return %arg0, %c0_i32 : i32, i32
  }
  func.func @transform_2(%arg0: i32) -> (i32, i32) {
    %c0_i32 = arith.constant 0 : i32
    %c0_i32_0 = arith.constant 0 : i32
    %c0_i32_1 = arith.constant 0 : i32
    return %c0_i32, %c0_i32_0 : i32, i32
  }
  func.func @transform_3(%arg0: i32) -> (i32, i32) {
    %c0_i32 = arith.constant 0 : i32
    %c0_i32_0 = arith.constant 0 : i32
    %c0_i32_1 = arith.constant 0 : i32
    return %c0_i32, %c0_i32_0 : i32, i32
  }
  func.func @transform_4(%arg0: i32) -> (i32, i32) {
    %c0_i32 = arith.constant 0 : i32
    %c0_i32_0 = arith.constant 0 : i32
    %c0_i32_1 = arith.constant 0 : i32
    return %c0_i32, %c0_i32_0 : i32, i32
  }
  func.func @transform_5(%arg0: i32) -> (i32, i32) {
    %c0_i32 = arith.constant 0 : i32
    %c0_i32_0 = arith.constant 0 : i32
    %c0_i32_1 = arith.constant 0 : i32
    return %c0_i32, %c0_i32_0 : i32, i32
  }
  func.func @transform_6(%arg0: i32) -> (i32, i32) {
    %c0_i32 = arith.constant 0 : i32
    %c0_i32_0 = arith.constant 0 : i32
    %c0_i32_1 = arith.constant 0 : i32
    return %c0_i32, %c0_i32_0 : i32, i32
  }
  func.func @transform_7(%arg0: i32) -> (i32, i32) {
    %c0_i32 = arith.constant 0 : i32
    %c0_i32_0 = arith.constant 0 : i32
    %c0_i32_1 = arith.constant 0 : i32
    return %c0_i32, %c0_i32_0 : i32, i32
  }
  func.func @transform_8(%arg0: i32) -> (i32, i32) {
    %c0_i32 = arith.constant 0 : i32
    %c0_i32_0 = arith.constant 0 : i32
    return %arg0, %c0_i32 : i32, i32
  }
  func.func @transform_9(%arg0: i32) -> (i32, i32) {
    %c0_i32 = arith.constant 0 : i32
    %c0_i32_0 = arith.constant 0 : i32
    return %arg0, %c0_i32 : i32, i32
  }
}

</mosaic_0001>

<bundles_post_ra>
// kernel: update_block.1
= control target key start
LH: loop header
LB: loop body
LE: loop exit
PB: predicated region body
PF: predicated region fallthrough
CT: control target
= control target key end

     0   :  { %15 = vsyncpa [#allocation3], 0  ;;  %s1576_s0 = inlined_call_operand.vmem [shape: f32[16,32], index: 0, kind: input, shape index: {}]   ;;  %s1577_s1 = inlined_call_operand.vmem [shape: f32[16,96], index: 1, kind: input, shape index: {}]   ;;  %s1578_s2 = inlined_call_operand.vmem [shape: f32[32,64], index: 2, kind: input, shape index: {}]   ;;  %s1579_s3 = inlined_call_operand.vmem [shape: f32[32,32], index: 3, kind: input, shape index: {}]   ;;  %s1580_s4 = inlined_call_operand.vmem [shape: f32[32,32], index: 4, kind: input, shape index: {}]   ;;  %s1581_s5 = inlined_call_operand.vmem [shape: f32[1,32], index: 5, kind: input, shape index: {}]   ;;  %s1582_s6 = inlined_call_operand.vmem [shape: f32[32,96], index: 6, kind: input, shape index: {}]   ;;  %s1583_s7 = inlined_call_operand.vmem [shape: f32[1,96], index: 7, kind: input, shape index: {}]   ;;  %s1584_s8 = inlined_call_operand.hbm [shape: f32[16,32], index: 8, kind: output, shape index: {0}]   ;;  %s1585_s9 = inlined_call_operand.vmem [shape: f32[16,96], index: 9, kind: output, shape index: {1}]  }
   0x1   :  { %17 = vsyncpa [#allocation3 + $0x1], 0  ;;  %s1341_s30 = smov 0   ;;  %s1343_s10 = smov 0  }
   0x2   :  { %s1345_s11 = smov 0   ;;  %s1347_s12 = smov 0  }
   0x3 LB: > { %s1362_s13 = sadd.s32 4294967295, %s1282_s12   ;;  %s1016_s14 = sadd.s32 4294967294, %s1282_s12   ;;  %s1282_s12 = sphi %s1347_s12, %s1597_s12   ;;  %s1278_s11 = sphi %s1345_s11, %s1596_s11   ;;  %s1274_s10 = sphi %s1343_s10, %s1595_s10   ;;  %s1270_s30 = sphi %s1341_s30, %s1594_s30  }
   0x4   : > { %s1366_s15 = sadd.s32 1, %s1282_s12   ;;  %s208_s16 = sadd.s32 1, %s1278_s11 }
   0x5   : > { %s205_s17 = ssub.s32 %s1282_s12, %s1366_s15  ;;  %p218_p0 = scmp.ne.s32.totalorder %s1278_s11, %s1274_s10 }
   0x6   : > { %p206_p1 = scmp.eq.s32.totalorder %s205_s17, 0  ;;  %p219_p2 = scmp.eq.s32.totalorder %s1362_s13, 1 }
   0x7   : > { %p224_p3 = scmp.ne.s32.totalorder %s1274_s10, %s1270_s30  ;;  %p225_p4 = scmp.eq.s32.totalorder %s1016_s14, 1 }
   0x8   : > { %s1377_s18 = scalar_select %p206_p1, %s1278_s11, %s208_s16  }
   0x9   : > { %p1379_p5 = por %p219_p2, %p218_p0  ;;  %p1383_p6 = por %p225_p4, %p224_p3 }
   0xa   : > { %p1019_p7 = scmp.ge.s32.totalorder %s1282_s12, 1  ;;  %p301_p8 = scmp.lt.s32.totalorder %s1282_s12, 3 }
   0xc   : > { %p302_p9 = pnand %p1019_p7, %p301_p8 }
   0xd   : > { %p344_p10 = scmp.lt.s32.totalorder (!%p302_p9), %s1362_s13, 1  ;;  %v357_v0 = vld [vmem:[%s1578_s2] sm:$0xff] (!%p302_p9)  ;;  %v358_v1 = vld [vmem:[%s1578_s2 + $0x8] sm:$0xff] (!%p302_p9)  ;;  %v359_v2 = vld [vmem:[%s1578_s2 + $0x10] sm:$0xff] (!%p302_p9)  ;;  %v1284_v3 = vmov (!%p302_p9), 0.0|0.0   ;;  %vm1285_vm0 = vmmov (!%p302_p9), 0  }
   0xe   : > { %305 = sbr.rel (%p302_p9) target bundleno = 1200 (0x4b0), region = 52  ;;  %1133 = vmatprep.subr.bf16.mxu0 (!%p302_p9), %v1284_v3  ;;  %v1134_v4 = vpack.c.bf16 (!%p302_p9), %v358_v1, %v357_v0  ;;  %1139 = vmatprep.subr.bf16.mxu1 (!%p302_p9), %v1284_v3  ;;  %v360_v5 = vld [vmem:[%s1578_s2 + $0x18] sm:$0xff] (!%p302_p9)  ;;  %v1286_v6 = vmov (!%p302_p9), 0.0   ;;  %s1588_s22 = smov (!%p302_p9), 96   ;;  %vm361_vm1 = vcmask (!%p302_p9), 261120   ;;  %v614_v13 = vld [vmem:[%s1579_s3] sm:$0xff] (!%p302_p9) }
   0xf   : > { %1075 = vmatprep.mubr.msk.f32.mxu0 (!%p302_p9), %vm1285_vm0, %v1286_v6  ;;  %1086 = vmatprep.mubr.msk.f32.mxu1 (!%p302_p9), %vm1285_vm0, %v1286_v6  ;;  %v1137_v7 = vpack.c.bf16 (!%p302_p9), %v360_v5, %v359_v2  ;;  %s1586_s23 = smov (!%p302_p9), 64   ;;  %v615_v14 = vld [vmem:[%s1579_s3 + $0x8] sm:$0xff] (!%p302_p9)  ;;  %v618_v15 = vld [vmem:[%s1580_s4] sm:$0xff] (!%p302_p9)  ;;  %v616_v18 = vld [vmem:[%s1579_s3 + $0x10] sm:$0xff] (!%p302_p9)  ;;  %s1289_s17 = smov (!%p302_p9), 32   ;;  %vm891_vm4 = vcmask (!%p302_p9), 523520  }
  0x10   : > { %1135 = vmatpush3.bf16.msra.mxu0 (!%p302_p9), %v1134_v4  ;;  %1141 = vmatpush3.bf16.msra.mxu1 (!%p302_p9), %v1134_v4  ;;  %v1158_v16 = vpack.c.bf16 (!%p302_p9), %v615_v14, %v614_v13  ;;  %v619_v17 = vld [vmem:[%s1580_s4 + $0x8] sm:$0xff] (!%p302_p9)  ;;  %v617_v19 = vld [vmem:[%s1579_s3 + $0x18] sm:$0xff] (!%p302_p9)  ;;  %v620_v21 = vld [vmem:[%s1580_s4 + $0x10] sm:$0xff] (!%p302_p9)  ;;  %s335_s28 = sand.u32 (!%p302_p9), 1, %s1274_s10   ;;  %vm898_vm5 = vcmask (!%p302_p9), 785920  }
  0x11   : > { %1136 = vmatprep.subr.bf16.mxu0 (!%p302_p9), %v1284_v3  ;;  %1142 = vmatprep.subr.bf16.mxu1 (!%p302_p9), %v1284_v3  ;;  %v1152_v20 = vpack.c.bf16 (!%p302_p9), %v619_v17, %v618_v15  ;;  %v621_v22 = vld [vmem:[%s1580_s4 + $0x18] sm:$0xff] (!%p302_p9)  ;;  %v1161_v23 = vpack.c.bf16 (!%p302_p9), %v617_v19, %v616_v18  ;;  %v785_v52 = vld [vmem:[%s1582_s6] sm:$0xff] (!%p302_p9)  ;;  %v786_v53 = vld [vmem:[%s1582_s6 + $0x8] sm:$0xff] (!%p302_p9)  ;;  %s901_s25 = scalar_lea.sflag (!%p302_p9), [#allocation3], %s335_s28 }
  0x12   : > { %v1155_v24 = vpack.c.bf16 (!%p302_p9), %v621_v22, %v620_v21  ;;  %v1164_v54 = vpack.c.bf16 (!%p302_p9), %v786_v53, %v785_v52  ;;  %v787_v55 = vld [vmem:[%s1582_s6 + $0x10] sm:$0xff] (!%p302_p9)  ;;  %v788_v56 = vld [vmem:[%s1582_s6 + $0x18] sm:$0xff] (!%p302_p9)  ;;  %v1029_v59 = vld [vmem:[%s1581_s5] ss:$0 sm:$0xff] (!%p302_p9) }
  0x13   : > { %v1167_v57 = vpack.c.bf16 (!%p302_p9), %v788_v56, %v787_v55 }
  0x14   : > { %1138 = vmatpush3.bf16.msra.mxu0 (!%p302_p9), %v1137_v7  ;;  %1144 = vmatpush3.bf16.msra.mxu1 (!%p302_p9), %v1137_v7 }
  0x15   : > { %s345_s29 = scalar_select %p344_p10, %s1362_s13, 1  ;;  %1145 = vmatprep.subr.bf16.mxu0 %v1284_v3  ;;  %1151 = vmatprep.subr.bf16.mxu1 %v1284_v3 }
  0x17   : > { %s1409_s14 = sshll.u32 %s345_s29, 3 }
  0x18   : > { %s351_s21 = scalar_lea.vmem %s1577_s1, %s1409_s14  ;;  %s347_s16 = scalar_lea.vmem %s1576_s0, %s1409_s14 }
  0x19   : > { %v356_v8 = vld [vmem:[%s351_s21] sm:$0xff]  ;;  %s1514_s27 = scalar_lea.vmem %s1585_s9, %s1409_s14  ;;  %s1593_s14 = smov 64  }
  0x1a   : > { %441 = vrot.lane.b32.xlu0 %v356_v8, %s1588_s22  ;;  %1076 = vmatmul.mubr.msk.f32.vlgmr.msra.gmra.mrb[0].mxu0 %vm361_vm1, %v356_v8  ;;  %s1592_s22 = smov 96   ;;  %v613_v35 = vld [vmem:[%s347_s16] sm:$0xff] }
  0x1b   : > { %1147 = vmatpush3.bf16.msra.mxu0 %v1134_v4  ;;  %1097 = vmatprep.mubr.msk.f32.mxu0 %vm1285_vm0, %v1286_v6  ;;  %v1031_v4 = vld [vmem:[%s1583_s7] ss:$0 sm:$0xff] }
  0x1c   : > { %1148 = vmatprep.subr.bf16.mxu0 %v1284_v3 }
  0x1e   : > { %523 = vrot.lane.b32.xlu0 %v356_v8, %s1586_s23  ;;  %s1034_s23 = sshll.u32 %s1362_s13, 7  ;;  %s1290_s13 = smov [#allocation2]  }
  0x1f   : > { %1150 = vmatpush3.bf16.msra.mxu0 %v1137_v7 }
  0x20   : > { %1157 = vmatprep.subr.bf16.mxu0 %v1284_v3 }
  0x8c   : > { %v442_v9 = vpop.permute.xlu0 %441 }
  0x8d   : > { %1087 = vmatmul.mubr.msk.f32.vlgmr.msra.gmra.mrb[0].mxu1 %vm361_vm1, %v442_v9 }
  0x8e   : > { %1108 = vmatprep.mubr.msk.f32.mxu1 %vm1285_vm0, %v1286_v6  ;;  %1153 = vmatpush3.bf16.msra.mxu1 %v1152_v20 }
  0x8f   : > { %1154 = vmatprep.subr.bf16.mxu1 %v1284_v3 }
  0x90   : > { %v524_v10 = vpop.permute.xlu0 %523 }
  0x91   : > { %1098 = vmatmul.mubr.msk.f32.vlgmr.msra.gmra.mrb[2].mxu0 %vm361_vm1, %v524_v10 }
  0x92   : > { %1119 = vmatprep.mubr.msk.f32.mxu0 %vm1285_vm0, %v1286_v6  ;;  %1159 = vmatpush3.bf16.msra.mxu0 %v1158_v16 }
  0x93   : > { %1160 = vmatprep.subr.bf16.mxu0 %v1284_v3  ;;  %1156 = vmatpush3.bf16.msra.mxu1 %v1155_v24 }
  0x94   : > { %1163 = vmatprep.subr.bf16.mxu1 %v1284_v3 }
  0x96   : > { %1162 = vmatpush3.bf16.msra.mxu0 %v1161_v23 }
  0x99   : > { %1120 = vmatmul.mubr.msk.f32.vlgmr.msra.gmra.mrb[4].mxu0 %vm361_vm1, %v613_v35 }
  0xed   : > { %v1432_v11 = vpop.f32.mrb[0].mxu0 }
  0xee   : > { %v1077_v12 = vpop.f32.mrb[1].mxu0  ;;  %v440_v26 = vmul.f32 %v1432_v11, %v1432_v11 }
 0x160   : > { %v1461_v25 = vpop.f32.mrb[0].mxu1 }
 0x161   : > { %v521_v27 = vmul.f32 %v1461_v25, %v1461_v25  ;;  %516 = vrot.lane.b32.xlu0 %v1461_v25, %s1592_s22  ;;  %v1088_v28 = vpop.f32.mrb[1].mxu1 }
 0x163   : > { %v522_v29 = vadd.f32 %v521_v27, %v440_v26 }
 0x164   : > { %v1469_v30 = vpop.f32.mrb[2].mxu0 }
 0x165   : > { %v603_v31 = vmul.f32 %v1469_v30, %v1469_v30  ;;  %v1099_v32 = vpop.f32.mrb[3].mxu0 }
 0x167   : > { %v604_v33 = vadd.f32 %v603_v31, %v522_v29 }
 0x169   : > { %v605_v34 = vadd.f32 1e-08, %v604_v33 }
 0x16b   : > { %1214 = vrsqrt.f32 %v605_v34  ;;  %vm608_vm2 = vcmp.eq.f32.partialorder %v605_v34, inf  ;;  %v611_v38 = vand.u32 2147483648, %v605_v34  ;;  %vm610_vm3 = vcmp.eq.f32.partialorder %v605_v34, 0.0 }
 0x16c   : > { %v766_v50 = vpop.f32.mrb[4].mxu0 }
 0x16d   : > { %v1121_v51 = vpop.f32.mrb[5].mxu0 }
 0x175   : > { %v1215_v36 = vpop.eup %1214 }
 0x176   : > { %v607_v37 = vmul.f32 %v1215_v36, %v605_v34 }
 0x178   : > { %v609_v39 = vsel %vm608_vm2, %v605_v34, %v607_v37 }
 0x179   : > { %v612_v40 = vsel %vm610_vm3, %v611_v38, %v609_v39 }
 0x17a   : > { %623 = vrot.lane.b32.xlu1 %v612_v40, %s1592_s22 }
 0x17e   : > { %436 = vrot.lane.b32.xlu1 %v1432_v11, %s1592_s22 }
 0x182   : > { %598 = vrot.lane.b32.xlu1 %v1469_v30, %s1592_s22  ;;  %s1020_s22 = sshll.u32 %s335_s28, 3 }
 0x183   : > { %s337_s29 = scalar_lea.vmem [#allocation2], %s1020_s22 }
 0x184   : > { %s918_s16 = sshll.u32 %s337_s29, 4  ;;  %s1533_s16 = int_to_ptr.vmem [resolvable:$true] %s918_s16 }
 0x185   : > { %s1220_s26 = scalar_lea.vmem %s1533_s16, 128 }
 0x186   : > { %p1221_p11 = scmp.ne.s32.totalorder %s1533_s16, %s1220_s26 }
 0x188   : > { %p1222_p12 = pnand %p1221_p11, %p1379_p5 }
 0x18a   : > { %p1223_p13 = pneg %p1222_p12 }
 0x1d3   : > { %v517_v42 = vpop.permute.xlu0 %516 }
 0x1d4   : > { %v519_v44 = vmul.f32 %v517_v42, %v1461_v25 }
 0x1ec   : > { %v624_v41 = vpop.permute.xlu1 %623 }
 0x1ed   : > { %1109 = vmatmul.mubr.msk.f32.vlgmr.msra.gmra.mrb[2].mxu1 %vm361_vm1, %v624_v41 }
 0x1ee   : > { %1130 = vmatprep.mubr.msk.f32.mxu1 %vm1285_vm0, %v1286_v6  ;;  %1165 = vmatpush3.bf16.msra.mxu1 %v1164_v54 }
 0x1ef   : > { %1166 = vmatprep.subr.bf16.mxu1 %v1284_v3 }
 0x1f0   : > { %v437_v43 = vpop.permute.xlu1 %436 }
 0x1f1   : > { %v439_v45 = vmul.f32 %v437_v43, %v1432_v11 }
 0x1f2   : > { %1168 = vmatpush3.bf16.msra.mxu1 %v1167_v57 }
 0x1f3   : > { %v520_v46 = vadd.f32 %v519_v44, %v439_v45 }
 0x1f4   : > { %v599_v47 = vpop.permute.xlu1 %598 }
 0x1f5   : > { %v601_v48 = vmul.f32 %v599_v47, %v1469_v30 }
 0x1f7   : > { %v602_v49 = vadd.f32 %v601_v48, %v520_v46 }
 0x1f9   : > { %870 = vrot.lane.b32.xlu0 %v602_v49, %s1289_s17 }
 0x26b   : > { %v871_v8 = vpop.permute.xlu0 %870 }
 0x2c0   : > { %v693_v58 = vpop.f32.mrb[2].mxu1 }
 0x2c1   : > { %v767_v60 = vadd.f32 %v766_v50, %v693_v58  ;;  %v1110_v61 = vpop.f32.mrb[3].mxu1 }
 0x2c3   : > { %v777_v62 = vadd.f32 %v1029_v59, %v767_v60 }
 0x2c5   : > { %v1030_v63 = vmul.f32 -1.442695, %v777_v62 }
 0x2c7   : > { %1216 = vpow2.f32 %v1030_v63 }
 0x2d1   : > { %v1217_v0 = vpop.eup %1216 }
 0x2d2   : > { %v781_v1 = vadd.f32 1.0, %v1217_v0 }
 0x2d4   : > { %1218 = vrcp.f32 %v781_v1 }
 0x2de   : > { %v1219_v2 = vpop.eup %1218 }
 0x2df   : > { %v784_v3 = vmul.f32 %v1219_v2, %v777_v62 }
 0x2e1   : > { %1131 = vmatmul.mubr.msk.f32.vlgmr.msra.gmra.mrb[4].mxu1 %vm361_vm1, %v784_v3 }
 0x3b4   : > { %v865_v5 = vpop.f32.mrb[4].mxu1 }
 0x3b5   : > { %v866_v6 = vadd.f32 %v1031_v4, %v865_v5  ;;  %v1132_v7 = vpop.f32.mrb[5].mxu1 }
 0x3b7   : > { %v873_v9 = vmul.f32 %v871_v8, %v866_v6  ;;  %v884_v10 = vmul.f32 %v866_v6, %v1432_v11  ;;  %v886_v12 = vmul.f32 %v866_v6, %v1461_v25  ;;  %v893_v16 = vmul.f32 %v866_v6, %v1469_v30 }
 0x3b9   : > { %875 = vrot.lane.b32.xlu1 %v873_v9, %s1289_s17  ;;  %885 = vst.msk [vmem:[%s1514_s27] sm:$0xff] %vm361_vm1, %v884_v10 }
 0x3bd   : > { %888 = vrot.lane.b32.xlu1 %v886_v12, %s1289_s17  ;;  %s1531_s17 = scalar_lea.hbm %s1584_s8, %s1034_s23 }
 0x42b   : > { %v876_v13 = vpop.permute.xlu1 %875 }
 0x42c   : > { %v878_v14 = vadd.f32 %v876_v13, %v866_v6 }
 0x42e   : > { %880 = vrot.lane.b32.xlu0 %v878_v14, %s1593_s14 }
 0x42f   : > { %v889_v15 = vpop.permute.xlu1 %888 }
 0x430   : > { %892 = vst.msk [vmem:[%s1514_s27] sm:$0xff] %vm891_vm4, %v889_v15 }
 0x432   : > { %895 = vrot.lane.b32.xlu0 %v893_v16, %s1593_s14  ;;  %s1224_s14 = sshll.u32 %s1290_s13, 4  ;;  %s1225_s14 = int_to_ptr.vmem [resolvable:$false] %s1224_s14 }
 0x433   : > { %s1226_s22 = scalar_lea.vmem %s1225_s14, 256  ;;  %p1227_p0 = scmp.lt.s32.totalorder %s1533_s16, %s1225_s14 }
 0x434   : > { %p1228_p1 = scmp.lt.s32.totalorder %s1226_s22, %s1220_s26 }
 0x436   : > { %p1229_p2 = por %p1228_p1, %p1227_p0 }
 0x438   : > { %p1230_p3 = pnand %p1229_p2, %p1223_p13 }
 0x4a0   : > { %v881_v11 = vpop.permute.xlu0 %880 }
 0x4a1   : > { %883 = vst.msk [vmem:[%s337_s29] sm:$0xff] %vm361_vm1, %v881_v11 }
 0x4a2   : > { %1233 = shalt.err (!%p1230_p3)
}
 0x4a3   : > { %s1234_s28 = scalar_lea.hbm %s1531_s17, 128  ;;  %s1238_s21 = scalar_lea.hbm %s1584_s8, 256 }
 0x4a4   : > { %p1235_p4 = scmp.ne.s32.totalorder %s1531_s17, %s1234_s28  ;;  %p1239_p9 = scmp.lt.u32.totalorder %s1531_s17, %s1584_s8 }
 0x4a5   : > { %p1240_p10 = scmp.lt.u32.totalorder %s1238_s21, %s1234_s28  ;;  %p1242_p12 = scmp.lt.u32.totalorder %s1234_s28, %s1531_s17 }
 0x4a6   : > { %p1236_p7 = pnand %p1235_p4, %p1379_p5 }
 0x4a7   : > { %p1241_p11 = por %p1240_p10, %p1239_p9 }
 0x4a8   : > { %p1237_p8 = pneg %p1236_p7 }
 0x4a9   : > { %p1243_p13 = por %p1242_p12, %p1241_p11 }
 0x4ab   : > { %p1244_p0 = pnand %p1243_p13, %p1237_p8 }
 0x4ad   : > { %1247 = shalt.err (!%p1244_p0)
}
 0x4ae   : > { %1169 = dma.vmem_to_hbm [thread:$0]  (%p1379_p5), %s1533_s16, 128, %s1531_s17, %s901_s25   ;;  %v896_v17 = vpop.permute.xlu0 %895 }
 0x4af   : > { %899 = vst.msk [vmem:[%s1514_s27] sm:$0xff] %vm898_vm5, %v896_v17 }
 0x4b0 PF: > { %p1175_p1 = scmp.ge.s32.totalorder %s1282_s12, 2  ;;  %s933_s26 = sand.u32 1, %s1270_s30  }
 0x4b1   : > { %s934_s14 = scalar_lea.sflag [#allocation3], %s933_s26 }
 0x4b2   : > { %p1172_p2 = pnand %p1175_p1, %p1383_p6 }
 0x4b4   : > { %1265 = dma.done.wait (!%p1172_p2), %s934_s14, 128  }
 0x4b5   : > { %1267 = vsyncadd (!%p1172_p2), %s934_s14, 4294967168  ;;  %p20_p5 = scmp.ge.s32.totalorder %s1366_s15, 4   ;;  %s1594_s30 = smov %s1274_s10 }
 0x4b6   : > { %s1595_s10 = smov %s1278_s11  ;;  %s1596_s11 = smov %s1377_s18 }
 0x4b7   : > { %s1597_s12 = smov %s1366_s15  ;;  %22 = sbr.rel (!%p20_p5) target bundleno = 3 (0x3), region = 102 }
 0x4be   :  { %946 = vsyncpa [#allocation3], 1 }
 0x4bf   :  { %948 = vsyncpa [#allocation3 + $0x1], 1 }

</bundles_post_ra>
